<compile_context>
chip_gen: v6e
topology: v6e:2x2x1
jax: 0.10.0
libtpu: 0.0.40
codegen_flags: <defaults>
</compile_context>

<pallas_src>
import jax
import jax.numpy as jnp
from jax.experimental import pallas as pl
from jax.experimental.pallas import tpu as pltpu


def _round_up(x, m):
    return ((x + m - 1) // m) * m


# ----------------------------------------------------------------------------
# Pallas kernel (one (batch, T-tile) grid step)
# ----------------------------------------------------------------------------

def _make_conv1d_kernel(*, K, dil, T_tile, has_halo, compute_dtype):
    """Fused Conv forward for one (b, t) tile.

    x_ref  : (T_tile, Cin)        f32   main input window (pre-padded)
    xh_ref : (halo_blk, Cin)      f32   halo rows right after the main window
    w_ref  : (Cout, K*Cin)        bf16  taps flattened k-major / c-minor
    b_ref  : (Cout, 1)            f32   bias
    o_ref  : (Cout, T_tile)             lane-dense output tile (time on lanes)
    """

    def kernel(*refs):
        if has_halo:
            x_ref, xh_ref, w_ref, b_ref, o_ref = refs
        else:
            x_ref, w_ref, b_ref, o_ref = refs

        # Cast to the MXU feed dtype FIRST: all subsequent layout work
        # (concat / transpose / im2col slices) is done once, in bf16.
        xm = x_ref[...].astype(compute_dtype)                 # (T_tile, Cin)
        if has_halo:
            xh = xh_ref[...].astype(compute_dtype)            # (halo_blk, Cin)
            win = jnp.concatenate([xm, xh], axis=0)           # sublane concat
        else:
            win = xm
        x_cf = win.T                                          # (Cin, T_win): time on lanes

        # im2col: one (K*Cin, T_tile) operand from K static shifted slices,
        # so the whole tile is a single MXU dot instead of K tiny matmuls.
        if K == 1:
            col = x_cf[:, :T_tile]
        else:
            col = jnp.concatenate(
                [x_cf[:, k * dil:k * dil + T_tile] for k in range(K)], axis=0)

        acc = jnp.dot(w_ref[...], col,
                      preferred_element_type=jnp.float32)     # (Cout, T_tile)
        # Lane-dense store, no output transpose, bias added once post-dot.
        o_ref[...] = (acc + b_ref[...]).astype(o_ref.dtype)

    return kernel


# ----------------------------------------------------------------------------
# Wrappers
# ----------------------------------------------------------------------------

def conv_forward_ct(x, weight, bias=None, *, stride=1, padding=0, dilation=1,
                    t_tile=512, compute_dtype=jnp.bfloat16):
    """Conv module forward, returning the lane-dense (B, Cout, T_out) layout.

    x      : (B, T, Cin)    float32
    weight : (Cout, Cin, K) float32 (torch Conv1d layout)
    bias   : (Cout,) float32 or None
    """
    if stride != 1:
        raise NotImplementedError("stride > 1 not implemented")  # TODO(synk)

    B, T, Cin = x.shape
    Cout, Cin_w, K = weight.shape
    assert Cin_w == Cin, "channel mismatch"
    halo = dilation * (K - 1)
    T_out = T + 2 * padding - halo
    assert T_out >= 1, "invalid conv geometry"

    # ----- tile geometry (T_tile multiple of 128; default 512 -> 2x256 MXU) --
    t_tile = _round_up(max(int(t_tile), 128), 128)
    T_tile = _round_up(T_out, 128) if T_out <= t_tile else t_tile
    if halo > T_tile:                       # receptive field longer than tile
        T_tile = _round_up(halo, 128)
    num_tiles = (T_out + T_tile - 1) // T_tile
    T_out_pad = num_tiles * T_tile

    has_halo = halo > 0
    if has_halo:
        # smallest multiple of 8 that covers the halo AND divides T_tile
        # (so the halo block's element offset (t+1)*T_tile is block-aligned).
        halo_blk = next(d for d in range(8, T_tile + 1, 8)
                        if d >= halo and T_tile % d == 0)
        ratio = T_tile // halo_blk
    else:
        halo_blk, ratio = 0, 0

    # ----- single wrapper-side pad: conv zero-padding + tile round-up --------
    T_in_pad = T_out_pad + halo_blk
    pad_left = padding
    pad_right = T_in_pad - padding - T
    x_pad = jnp.pad(x, ((0, 0), (pad_left, pad_right), (0, 0)))

    # (Cout, Cin, K) -> (Cout, K*Cin), k-major / c-minor to match the in-kernel
    # im2col row order; cast to the MXU feed dtype once here.
    w2 = jnp.transpose(weight, (0, 2, 1)).reshape(Cout, K * Cin).astype(compute_dtype)
    b2 = (jnp.zeros((Cout,), jnp.float32) if bias is None
          else bias.astype(jnp.float32)).reshape(Cout, 1)

    kernel = _make_conv1d_kernel(K=K, dil=dilation, T_tile=T_tile,
                                 has_halo=has_halo, compute_dtype=compute_dtype)

    in_specs = [pl.BlockSpec((None, T_tile, Cin), lambda b, t: (b, t, 0))]
    operands = [x_pad]
    if has_halo:
        in_specs.append(
            pl.BlockSpec((None, halo_blk, Cin),
                         lambda b, t: (b, (t + 1) * ratio, 0)))
        operands.append(x_pad)               # same array, halo window
    in_specs += [pl.BlockSpec((Cout, K * Cin), lambda b, t: (0, 0)),
                 pl.BlockSpec((Cout, 1), lambda b, t: (0, 0))]
    operands += [w2, b2]

    # ----- VMEM budget (lane-padding aware) + cost estimate ------------------
    def blk_bytes(sub, lane, itemsize):
        return _round_up(max(sub, 1), 8) * _round_up(max(lane, 1), 128) * itemsize

    vmem_est = (2 * blk_bytes(T_tile, Cin, 4)                       # x (dbl buf)
                + (2 * blk_bytes(halo_blk, Cin, 4) if has_halo else 0)
                + 2 * blk_bytes(Cout, T_tile, 4)                    # out (dbl buf)
                + 2 * blk_bytes(Cout, K * Cin, 2)                   # weights
                + 2 * blk_bytes(Cout, 1, 4)                         # bias
                + blk_bytes(T_tile + halo_blk, Cin, 2)              # win (bf16)
                + blk_bytes(Cin, T_tile + halo_blk, 2)              # x_cf
                + 2 * blk_bytes(K * Cin, T_tile, 2)                 # taps + col
                + blk_bytes(Cout, T_tile, 4))                       # acc
    vmem_limit = int(min(64 * 1024 * 1024, max(2 * vmem_est, 16 * 1024 * 1024)))

    cost = pl.CostEstimate(
        flops=2 * B * T_out * Cout * K * Cin,
        transcendentals=0,
        bytes_accessed=int(B * T * Cin * 4 + Cout * Cin * K * 4
                           + B * T_out * Cout * 4))

    y_ct = pl.pallas_call(
        kernel,
        out_shape=jax.ShapeDtypeStruct((B, Cout, T_out_pad), x.dtype),
        grid=(B, num_tiles),
        in_specs=in_specs,
        out_specs=pl.BlockSpec((None, Cout, T_tile), lambda b, t: (b, 0, t)),
        compiler_params=pltpu.CompilerParams(
            dimension_semantics=("parallel", "parallel"),
            vmem_limit_bytes=vmem_limit),
        cost_estimate=cost,
    )(*operands)

    return y_ct[:, :, :T_out]                 # drop tile round-up columns


def conv_forward(x, weight, bias=None, **kwargs):
    """Module-exact forward: returns (B, T_out, Cout) like the PyTorch Conv."""
    y_ct = conv_forward_ct(x, weight, bias, **kwargs)
    # Module contract is NTC; consumers that can take the lane-dense CT layout
    # should call conv_forward_ct directly and fuse this transpose away.
    return jnp.swapaxes(y_ct, 1, 2)


# ----------------------------------------------------------------------------
# Pure-JAX reference of the same module forward (verification only)
# ----------------------------------------------------------------------------

def _conv_module_ref(x, weight, bias, *, padding, dilation, cast_dtype=None):
    B, T, Cin = x.shape
    Cout, _, K = weight.shape
    x_cf = jnp.swapaxes(x, 1, 2)                               # (B, Cin, T)
    if padding > 0:
        x_cf = jnp.pad(x_cf, ((0, 0), (0, 0), (padding, padding)))
    T_out = x_cf.shape[2] - dilation * (K - 1)
    w = weight
    if cast_dtype is not None:                                 # match the bf16 MXU feed
        x_cf = x_cf.astype(cast_dtype)
        w = w.astype(cast_dtype)
    out = jnp.zeros((B, Cout, T_out), jnp.float32)
    for k in range(K):
        out = out + jnp.einsum(
            "oc,bct->bot", w[:, :, k],
            x_cf[:, :, k * dilation:k * dilation + T_out],
            preferred_element_type=jnp.float32,
            precision=jax.lax.Precision.HIGHEST)
    if bias is not None:
        out = out + bias.astype(jnp.float32)[None, :, None]
    return jnp.swapaxes(out, 1, 2).astype(x.dtype)


# ----------------------------------------------------------------------------

if __name__ == "__main__":
    key = jax.random.PRNGKey(0)

    def torch_default_init(k, Cout, Cin, K):
        kw, kb = jax.random.split(k)
        bound = 1.0 / (Cin * K) ** 0.5
        w = jax.random.uniform(kw, (Cout, Cin, K), jnp.float32, -bound, bound)
        b = jax.random.uniform(kb, (Cout,), jnp.float32, -bound, bound)
        return w, b

    Cin, Cout = 8, 16
    cases = [
        dict(B=2, T=16, kernel_size=1, padding=0, dilation=1, t_tile=512),  # Conv defaults (1x1)
        dict(B=2, T=16, kernel_size=3, padding=2, dilation=2, t_tile=512),  # dilated, 'same' length
        dict(B=2, T=384, kernel_size=3, padding=2, dilation=2, t_tile=128), # multi-tile + halo path
    ]
    for idx, case in enumerate(cases):
        key, kx, kk = jax.random.split(key, 3)
        B, T = case["B"], case["T"]
        K, pad, dil = case["kernel_size"], case["padding"], case["dilation"]
        x = jax.random.normal(kx, (B, T, Cin), jnp.float32)
        w, b = torch_default_init(kk, Cout, Cin, K)

        y = conv_forward(x, w, b, padding=pad, dilation=dil, t_tile=case["t_tile"])
        y = jax.block_until_ready(y)

        # exact-precision-matched reference (bf16 operands, f32 accumulation)
        y_ref_bf16 = _conv_module_ref(x, w, b, padding=pad, dilation=dil,
                                      cast_dtype=jnp.bfloat16)
        # full-f32 reference (sanity check on the bf16 MXU path)
        y_ref_f32 = _conv_module_ref(x, w, b, padding=pad, dilation=dil)

        assert y.shape == y_ref_f32.shape, (y.shape, y_ref_f32.shape)
        assert jnp.allclose(y, y_ref_bf16, atol=1e-4, rtol=1e-4), \
            f"case {idx} mismatch vs matched-precision reference: {case}"
        assert jnp.allclose(y, y_ref_f32, atol=1e-1), \
            f"case {idx} mismatch vs f32 reference: {case}"

    print("KERNEL_OK")
</pallas_src>

<mosaic_0001>
module attributes {stable_mosaic.version = 11 : i64} {
  func.func @kernel(%arg0: i32, %arg1: i32, %arg2: memref<1x128x8xf32, #tpu.memory_space<vmem>>, %arg3: memref<16x8xbf16, #tpu.memory_space<vmem>>, %arg4: memref<16x1xf32, #tpu.memory_space<vmem>>, %arg5: memref<1x16x128xf32, #tpu.memory_space<vmem>>) attributes {dimension_semantics = [#tpu.dimension_semantics<parallel>, #tpu.dimension_semantics<parallel>], iteration_bounds = array<i64: 2, 1>, scalar_prefetch = 0 : i64, scratch_operands = 0 : i64, tpu.core_type = #tpu.core_type<tc>, window_params = [{transform_indices = @transform_0, window_bounds = array<i64: 1, 128, 8>}, {pipeline_mode = #tpu.pipeline_mode<synchronous>, transform_indices = @transform_1, window_bounds = array<i64: 16, 8>}, {pipeline_mode = #tpu.pipeline_mode<synchronous>, transform_indices = @transform_2, window_bounds = array<i64: 16, 1>}, {transform_indices = @transform_3, window_bounds = array<i64: 1, 16, 128>}]} {
    %c0 = arith.constant 0 : index
    %c0_0 = arith.constant 0 : index
    %c0_1 = arith.constant 0 : index
    %0 = vector.load %arg2[%c0, %c0_0, %c0_1] : memref<1x128x8xf32, #tpu.memory_space<vmem>>, vector<1x128x8xf32>
    %1 = vector.shape_cast %0 : vector<1x128x8xf32> to vector<128x8xf32>
    %2 = arith.truncf %1 : vector<128x8xf32> to vector<128x8xbf16>
    %3 = tpu.transpose %2, [1, 0] : vector<128x8xbf16> -> vector<8x128xbf16>
    %c0_2 = arith.constant 0 : index
    %c0_3 = arith.constant 0 : index
    %4 = vector.load %arg3[%c0_2, %c0_3] : memref<16x8xbf16, #tpu.memory_space<vmem>>, vector<16x8xbf16>
    %cst = arith.constant dense<0.000000e+00> : vector<16x128xf32>
    %5 = tpu.matmul %4, %3, %cst {dimension_numbers = #tpu.dot_dimension_numbers<[1], [0], [0], [1], [0, 0, 1, 1], [], []>} : vector<16x8xbf16>, vector<8x128xbf16>, vector<16x128xf32> -> vector<16x128xf32>
    %c0_4 = arith.constant 0 : index
    %c0_5 = arith.constant 0 : index
    %6 = vector.load %arg4[%c0_4, %c0_5] : memref<16x1xf32, #tpu.memory_space<vmem>>, vector<16x1xf32>
    %7 = vector.broadcast %6 : vector<16x1xf32> to vector<16x128xf32>
    %8 = arith.addf %5, %7 : vector<16x128xf32>
    %c0_6 = arith.constant 0 : index
    %c0_7 = arith.constant 0 : index
    %c0_8 = arith.constant 0 : index
    %9 = vector.load %arg5[%c0_6, %c0_7, %c0_8] : memref<1x16x128xf32, #tpu.memory_space<vmem>>, vector<1x16x128xf32>
    %10 = vector.shape_cast %9 : vector<1x16x128xf32> to vector<16x128xf32>
    %11 = vector.shape_cast %8 : vector<16x128xf32> to vector<1x16x128xf32>
    tpu.vector_store %arg5[%c0_6, %c0_7, %c0_8], %11 {strides = array<i32>} : memref<1x16x128xf32, #tpu.memory_space<vmem>>, vector<1x16x128xf32>,
    return
  }
  func.func @transform_0(%arg0: i32, %arg1: i32) -> (i32, i32, i32) {
    %c0_i32 = arith.constant 0 : i32
    %c0_i32_0 = arith.constant 0 : i32
    return %arg0, %arg1, %c0_i32 : i32, i32, i32
  }
  func.func @transform_1(%arg0: i32, %arg1: i32) -> (i32, i32) {
    %c0_i32 = arith.constant 0 : i32
    %c0_i32_0 = arith.constant 0 : i32
    %c0_i32_1 = arith.constant 0 : i32
    return %c0_i32, %c0_i32_0 : i32, i32
  }
  func.func @transform_2(%arg0: i32, %arg1: i32) -> (i32, i32) {
    %c0_i32 = arith.constant 0 : i32
    %c0_i32_0 = arith.constant 0 : i32
    %c0_i32_1 = arith.constant 0 : i32
    return %c0_i32, %c0_i32_0 : i32, i32
  }
  func.func @transform_3(%arg0: i32, %arg1: i32) -> (i32, i32, i32) {
    %c0_i32 = arith.constant 0 : i32
    %c0_i32_0 = arith.constant 0 : i32
    return %arg0, %c0_i32, %arg1 : i32, i32, i32
  }
}

</mosaic_0001>

<bundles_post_ra>
// kernel: tpu_custom_call.1
= control target key start
LH: loop header
LB: loop body
LE: loop exit
PB: predicated region body
PF: predicated region fallthrough
CT: control target
= control target key end

     0   :  { %8 = vsyncpa [#allocation3], 0  ;;  %s769_s0 = inlined_call_operand.vmem [shape: f32[2,128,8], index: 0, kind: input, shape index: {}]   ;;  %s770_s1 = inlined_call_operand.vmem [shape: bf16[16,8], index: 1, kind: input, shape index: {}]   ;;  %s771_s2 = inlined_call_operand.vmem [shape: f32[16,1], index: 2, kind: input, shape index: {}]   ;;  %s772_s3 = inlined_call_operand.hbm [shape: f32[2,16,128], index: 3, kind: output, shape index: {}]  }
   0x1   :  { %10 = vsyncpa [#allocation3 + $0x1], 0  ;;  %s619_s12 = smov 0   ;;  %s621_s13 = smov 0  }
   0x2   :  { %s623_s14 = smov 0   ;;  %s625_s15 = smov 0  }
   0x3   :  { %s627_s16 = smov 0   ;;  %s629_s17 = smov 0  }
   0x4 LB: > { %s407_s18 = sadd.s32 4294967295, %s591_s17   ;;  %s408_s19 = sadd.s32 4294967294, %s591_s17   ;;  %s591_s17 = sphi %s629_s17, %s16_s17   ;;  %s587_s16 = sphi %s627_s16, %s779_s16   ;;  %s583_s15 = sphi %s625_s15, %s778_s15   ;;  %s579_s14 = sphi %s623_s14, %s777_s14   ;;  %s575_s13 = sphi %s621_s13, %s776_s13   ;;  %s571_s12 = sphi %s619_s12, %s775_s12  }
   0x5   : > { %s28_s20 = sadd.s32 1, %s587_s16  ;;  %s107_s21 = sadd.s32 1, %s579_s14 }
   0x6   : > { %p30_p0 = scmp.ge.s32.totalorder %s28_s20, 2  ;;  %p117_p1 = scmp.ne.s32.totalorder %s579_s14, %s575_s13 }
   0x7   : > { %p118_p2 = scmp.eq.s32.totalorder %s407_s18, 1  ;;  %p123_p3 = scmp.ne.s32.totalorder %s575_s13, %s571_s12 }
   0x8   : > { %s781_s20 = smov (%p30_p0, %s28_s20), 0  ;;  %p124_p5 = scmp.eq.s32.totalorder %s408_s19, 1 }
   0x9   : > { %p659_p4 = por %p118_p2, %p117_p1  ;;  %s102_s23 = ssub.s32 %s587_s16, %s781_s20 }
   0xa   : > { %p411_p6 = scmp.ge.s32.totalorder %s591_s17, 1  ;;  %p105_p7 = scmp.eq.s32.totalorder %s102_s23, 0 }
   0xb   : > { %p666_p8 = por %p124_p5, %p123_p3  ;;  %p161_p9 = scmp.lt.s32.totalorder %s591_s17, 3 }
   0xc   : > { %s672_s25 = scalar_select %p105_p7, %s579_s14, %s107_s21  }
   0xd   : > { %p162_p10 = pnand %p411_p6, %p161_p9 }
   0xe   : > { %p190_p11 = scmp.lt.s32.totalorder (!%p162_p10), %s583_s15, 1  ;;  %s186_s10 = sand.u32 (!%p162_p10), 1, %s575_s13  }
   0xf   : > { %165 = sbr.rel (%p162_p10) target bundleno = 304 (0x130), region = 32  ;;  %s412_s11 = sshll.u32 (!%p162_p10), %s186_s10, 4 }
  0x10   : > { %s188_s18 = scalar_lea.vmem (!%p162_p10), [#allocation2], %s412_s11  ;;  %s423_s21 = sshll.u32 (!%p162_p10), %s583_s15, 8 }
  0x11   : > { %s329_s19 = sshll.u32 (!%p162_p10), %s188_s18, 4  ;;  %s722_s27 = scalar_lea.hbm (!%p162_p10), %s772_s3, %s423_s21  ;;  %s717_s19 = int_to_ptr.vmem [resolvable:$true] %s329_s19 }
  0x14   : > { %v593_v0 = vmov 0.0   ;;  %vm594_vm0 = vmmov 0   ;;  %v226_v1 = vld [vmem:[%s771_s2] sm:$0xff]  ;;  %s191_s28 = scalar_select %p190_p11, %s583_s15, 1  ;;  %v595_v2 = vmov 0   ;;  %v227_v3 = vld [vmem:[%s771_s2 + $0x8] sm:$0xff] }
  0x15   : > { %433 = vmatprep.subr.bf16.mxu0 %v593_v0  ;;  %449 = vmatprep.mubr.msk.bf16.mxu0 %vm594_vm0, %v593_v0  ;;  %vm243_vm1 = vcmask 64512   ;;  %v514_v36 = vld [vmem:[%s770_s1] sm:$0xff]   ;;  %s515_s15 = scalar_lea.vmem %s717_s19, 256 }
  0x16   : > { %513 = vset.pattern.permute.xlu0 %v595_v2  ;;  %s422_s29 = sshll.u32 %s191_s28, 7  ;;  %s724_s28 = scalar_lea.sflag [#allocation3], %s186_s10 }
  0x17   : > { %230 = vperm.xlu0 %513, %v226_v1   ;;  %s685_s7 = scalar_lea.vmem %s769_s0, %s422_s29  ;;  %p516_p12 = scmp.ne.s32.totalorder %s717_s19, %s515_s15 }
  0x18   : > { %v214_v4 = vld [vmem:[%s685_s7 + $0x70] sm:$0xff]  ;;  %v215_v5 = vld [vmem:[%s685_s7 + $0x78] sm:$0xff]  ;;  %v212_v7 = vld [vmem:[%s685_s7 + $0x60] sm:$0xff]  ;;  %s596_s29 = smov [#allocation2]  }
  0x19   : > { %v223_v6 = vpack.c.bf16 %v215_v5, %v214_v4  ;;  %v213_v8 = vld [vmem:[%s685_s7 + $0x68] sm:$0xff]  ;;  %v210_v12 = vld [vmem:[%s685_s7 + $0x50] sm:$0xff]  ;;  %v211_v13 = vld [vmem:[%s685_s7 + $0x58] sm:$0xff]  ;;  %p517_p13 = pnand %p516_p12, %p659_p4  ;;  %s519_s30 = sshll.u32 %s596_s29, 4  ;;  %s520_s30 = int_to_ptr.vmem [resolvable:$false] %s519_s30 }
  0x1a   : > { %v222_v10 = vpack.c.bf16 %v213_v8, %v212_v7  ;;  %v221_v14 = vpack.c.bf16 %v211_v13, %v210_v12  ;;  %v208_v16 = vld [vmem:[%s685_s7 + $0x40] sm:$0xff]  ;;  %v209_v17 = vld [vmem:[%s685_s7 + $0x48] sm:$0xff]  ;;  %v206_v20 = vld [vmem:[%s685_s7 + $0x30] sm:$0xff]  ;;  %s521_s4 = scalar_lea.vmem %s520_s30, 512  ;;  %p522_p1 = scmp.lt.s32.totalorder %s717_s19, %s520_s30 }
  0x1b   : > { %235 = vperm.xlu0 %513, %v227_v3   ;;  %v269_v9 = vsel %vm243_vm1, %v223_v6, 0  ;;  %v220_v18 = vpack.c.bf16 %v209_v17, %v208_v16  ;;  %v207_v21 = vld [vmem:[%s685_s7 + $0x38] sm:$0xff]  ;;  %v204_v24 = vld [vmem:[%s685_s7 + $0x20] sm:$0xff]  ;;  %v205_v25 = vld [vmem:[%s685_s7 + $0x28] sm:$0xff]  ;;  %p518_p0 = pneg %p517_p13  ;;  %p523_p2 = scmp.lt.s32.totalorder %s521_s4, %s515_s15 }
  0x1c   : > { %434 = vmatpush3.bf16.xpose.msra.mxu0 %v269_v9  ;;  %v266_v11 = vsel %vm243_vm1, %v222_v10, 0  ;;  %v263_v15 = vsel %vm243_vm1, %v221_v14, 0  ;;  %v219_v22 = vpack.c.bf16 %v207_v21, %v206_v20  ;;  %v218_v26 = vpack.c.bf16 %v205_v25, %v204_v24  ;;  %v202_v28 = vld [vmem:[%s685_s7 + $0x10] sm:$0xff]  ;;  %v203_v29 = vld [vmem:[%s685_s7 + $0x18] sm:$0xff]  ;;  %v200_v32 = vld [vmem:[%s685_s7] sm:$0xff] }
  0x1d   : > { %435 = vmatprep.subr.bf16.mxu0 %v593_v0  ;;  %v260_v19 = vsel %vm243_vm1, %v220_v18, 0  ;;  %v217_v30 = vpack.c.bf16 %v203_v29, %v202_v28  ;;  %v201_v33 = vld [vmem:[%s685_s7 + $0x8] sm:$0xff]  ;;  %p524_p3 = por %p523_p2, %p522_p1 }
  0x1e   : > { %v257_v23 = vsel %vm243_vm1, %v219_v22, 0  ;;  %v254_v27 = vsel %vm243_vm1, %v218_v26, 0  ;;  %v216_v34 = vpack.c.bf16 %v201_v33, %v200_v32 }
  0x1f   : > { %v251_v31 = vsel %vm243_vm1, %v217_v30, 0  ;;  %p525_p5 = pnand %p524_p3, %p518_p0 }
  0x20   : > { %v248_v35 = vsel %vm243_vm1, %v216_v34, 0 }
  0x24   : > { %436 = vmatpush3.bf16.xpose.msra.mxu0 %v266_v11 }
  0x25   : > { %437 = vmatprep.subr.bf16.mxu0 %v593_v0 }
  0x2c   : > { %438 = vmatpush3.bf16.xpose.msra.mxu0 %v263_v15 }
  0x2d   : > { %439 = vmatprep.subr.bf16.mxu0 %v593_v0 }
  0x34   : > { %440 = vmatpush3.bf16.xpose.msra.mxu0 %v260_v19 }
  0x35   : > { %441 = vmatprep.subr.bf16.mxu0 %v593_v0 }
  0x3c   : > { %442 = vmatpush3.bf16.xpose.msra.mxu0 %v257_v23 }
  0x3d   : > { %443 = vmatprep.subr.bf16.mxu0 %v593_v0 }
  0x44   : > { %444 = vmatpush3.bf16.xpose.msra.mxu0 %v254_v27 }
  0x45   : > { %445 = vmatprep.subr.bf16.mxu0 %v593_v0 }
  0x4c   : > { %446 = vmatpush3.bf16.xpose.msra.mxu0 %v251_v31 }
  0x4d   : > { %447 = vmatprep.subr.bf16.mxu0 %v593_v0 }
  0x54   : > { %448 = vmatpush3.bf16.xpose.msra.mxu0 %v248_v35 }
  0x5b   : > { %450 = vmatmul.mubr.msk.bf16.vlgmr.msra.gmra.mxu0 %vm243_vm1, %v514_v36 }
  0x92   : > { %v231_v37 = vpop.permute.xlu0 %230 }
  0x96   : > { %v236_v41 = vpop.permute.xlu0 %235 }
 0x11b   : > { %v305_v38 = vpop.f32.mrf.mxu0 }
 0x11c   : > { %v306_v39 = vadd.f32 %v305_v38, %v231_v37 }
 0x11d   : > { %v451_v40 = vpop.f32.mrf.mxu0 }
 0x11e   : > { %312 = vst [vmem:[%s188_s18] sm:$0xff] %v306_v39 }
 0x11f   : > { %v308_v42 = vpop.f32.mrf.mxu0 }
 0x120   : > { %v309_v43 = vadd.f32 %v308_v42, %v236_v41 }
 0x121   : > { %v452_v44 = vpop.f32.mrf.mxu0 }
 0x122   : > { %313 = vst [vmem:[%s188_s18 + $0x8] sm:$0xff] %v309_v43 }
 0x123   : > { %528 = shalt.err (!%p525_p5)
}
 0x124   : > { %s529_s5 = scalar_lea.hbm %s722_s27, 256  ;;  %s533_s8 = scalar_lea.hbm %s772_s3, 512 }
 0x125   : > { %p530_p6 = scmp.ne.s32.totalorder %s722_s27, %s529_s5  ;;  %p534_p10 = scmp.lt.s32.totalorder %s722_s27, %s772_s3 }
 0x126   : > { %p535_p11 = scmp.lt.s32.totalorder %s533_s8, %s529_s5 }
 0x127   : > { %p531_p7 = pnand %p530_p6, %p659_p4 }
 0x128   : > { %p536_p12 = por %p535_p11, %p534_p10 }
 0x129   : > { %p532_p9 = pneg %p531_p7 }
 0x12b   : > { %p537_p13 = pnand %p536_p12, %p532_p9 }
 0x12d   : > { %540 = shalt.err (!%p537_p13)
}
 0x12e   : > { %s597_s11 = smov 128   ;;  %s598_s18 = smov 8  }
 0x12f   : > { %453 = dma.vmem_to_hbm [thread:$0]  (%p659_p4), %s717_s19, 256, %s722_s27, %s724_s28, %s597_s11, %s597_s11, %s598_s18  }
 0x130 PF: > { %p459_p0 = scmp.ge.s32.totalorder %s591_s17, 2  ;;  %s344_s21 = sand.u32 1, %s571_s12  }
 0x131   : > { %s345_s23 = scalar_lea.sflag [#allocation3], %s344_s21 }
 0x132   : > { %p456_p1 = pnand %p459_p0, %p666_p8 }
 0x134   : > { %p457_p2 = pneg %p456_p1 }
 0x136   : > { %566 = dma.done.wait (%p457_p2), %s345_s23, 256  }
 0x137   : > { %568 = vsyncadd (%p457_p2), %s345_s23, 4294967040  ;;  %s16_s17 = sadd.s32 1, %s591_s17   ;;  %s775_s12 = smov %s575_s13 }
 0x138   : > { %p13_p3 = scmp.ge.s32.totalorder %s16_s17, 4   ;;  %s776_s13 = smov %s579_s14 }
 0x139   : > { %s777_s14 = smov %s672_s25  ;;  %s778_s15 = smov %s587_s16 }
 0x13a   : > { %s779_s16 = smov %s781_s20  ;;  %15 = sbr.rel (!%p13_p3) target bundleno = 4 (0x4), region = 67 }
 0x13f   :  { %350 = vsyncpa [#allocation3], 1 }
 0x140   :  { %352 = vsyncpa [#allocation3 + $0x1], 1 }

</bundles_post_ra>
